<compile_context>
chip_gen: v7x
topology: tpu7x:2x2x1
jax: 0.10.0
libtpu: 0.0.40
codegen_flags: <defaults>
</compile_context>

<pallas_src>
import jax
import jax.numpy as jnp
from jax.experimental import pallas as pl
from jax.experimental.pallas import tpu as pltpu

HIDDEN_SIZE = 32
INPUT_SIZE = 10
NUM_LAYERS = 2
OUTPUT_SIZE = 2
OUT_PAD = 128  # lane-dense padded output width


def _rnn_kernel(xf_ref,    # (T*B, input_size)          VMEM (time-major, flattened)
                wih0_ref,  # (input_size, hidden)       VMEM
                b0_ref,    # (1, hidden)  b_ih0+b_hh0   VMEM
                wrec_ref,  # (2*hidden, 2*hidden)       VMEM  block-diag [whh0, whh1]
                wih1_ref,  # (hidden, hidden)           VMEM
                b1_ref,    # (1, hidden)  b_ih1+b_hh1   VMEM
                wfc_ref,   # (hidden, OUT_PAD)          VMEM  (zero-padded fc weight)
                bfc_ref,   # (1, OUT_PAD)               VMEM
                out_ref):  # (B, OUT_PAD)               VMEM
    tb = xf_ref.shape[0]
    b = out_ref.shape[0]
    t_steps = tb // b
    h = HIDDEN_SIZE

    # Hoisted layer-0 input projection for ALL timesteps: a single well-shaped
    # (T*B, I) x (I, H) matmul, with the combined layer-0 bias folded in once.
    xproj = (jnp.dot(xf_ref[...], wih0_ref[...],
                     preferred_element_type=jnp.float32)
             + b0_ref[...])                                   # (T*B, H)

    # Hoisted layer-1 bias broadcast (once, not per step: JAX does not CSE it).
    b1 = jnp.broadcast_to(b1_ref[...], (b, h))                # (B, H)

    # Fused recurrent state [h0 | h1]; zeros match h0 = torch.zeros(...).
    state = jnp.zeros((b, 2 * h), jnp.float32)

    # Fully unrolled static time loop (tiny live state: a couple of vregs).
    for t in range(t_steps):
        # Both recurrent contributions in ONE matmul against the block-diagonal
        # weight: rec[:, :H] = h0 @ W_hh0,  rec[:, H:] = h1 @ W_hh1.
        rec = jnp.dot(state, wrec_ref[...],
                      preferred_element_type=jnp.float32)     # (B, 2H)

        new_h0 = jnp.tanh(xproj[t * b:(t + 1) * b] + rec[:, :h])
        new_h1 = jnp.tanh(jnp.dot(new_h0, wih1_ref[...],
                                  preferred_element_type=jnp.float32)
                          + rec[:, h:] + b1)
        state = jnp.concatenate([new_h0, new_h1], axis=-1)

    # fc applied to the last timestep of the top layer (lane-padded columns,
    # so this is an unmasked lane-dense store).
    out_ref[...] = (jnp.dot(state[:, h:], wfc_ref[...],
                            preferred_element_type=jnp.float32)
                    + bfc_ref[...]).astype(out_ref.dtype)


@jax.jit
def rnn_forward(x, params):
    """x: (B, T, input_size) float32 (PyTorch batch-first layout)."""
    b, t, _ = x.shape
    (wih0, whh0, bih0, bhh0,
     wih1, whh1, bih1, bhh1,
     wfc, bfc) = params

    # Time-major, flattened to (T*B, input_size) so the hoisted input
    # projection is one matmul and per-step slices are static.
    x_flat = jnp.transpose(x, (1, 0, 2)).reshape(t * b, INPUT_SIZE)

    # Pre-combined biases (hoisted out of the recurrence).
    b0 = bih0 + bhh0
    b1 = bih1 + bhh1

    # Block-diagonal fused recurrent weight [[W_hh0, 0], [0, W_hh1]].
    wrec = jnp.zeros((2 * HIDDEN_SIZE, 2 * HIDDEN_SIZE), jnp.float32)
    wrec = wrec.at[:HIDDEN_SIZE, :HIDDEN_SIZE].set(whh0)
    wrec = wrec.at[HIDDEN_SIZE:, HIDDEN_SIZE:].set(whh1)

    # Lane-pad fc weight / bias to 128 output columns (unmasked final store);
    # MXU cost is unchanged since the array is 128 lanes wide regardless.
    wfc_p = jnp.zeros((HIDDEN_SIZE, OUT_PAD), jnp.float32)
    wfc_p = wfc_p.at[:, :OUTPUT_SIZE].set(wfc)
    bfc_p = jnp.zeros((1, OUT_PAD), jnp.float32).at[:, :OUTPUT_SIZE].set(bfc)

    vmem = pl.BlockSpec(memory_space=pltpu.MemorySpace.VMEM)
    out_padded = pl.pallas_call(
        _rnn_kernel,
        out_shape=jax.ShapeDtypeStruct((b, OUT_PAD), jnp.float32),
        in_specs=[vmem] * 8,
        out_specs=vmem,
    )(x_flat, wih0, b0, wrec, wih1, b1, wfc_p, bfc_p)

    return out_padded[:, :OUTPUT_SIZE]


def init_params(key):
    """Deterministic parameter init matching the PyTorch module's shapes.

    PyTorch stores weight_ih_l{k}: (hidden, in), weight_hh_l{k}: (hidden, hidden),
    fc.weight: (output, hidden).  We store the transposed (in, out) layout so the
    kernel computes x @ W directly.
    """
    bound = 1.0 / jnp.sqrt(jnp.float32(HIDDEN_SIZE))
    keys = jax.random.split(key, 10)

    def u(k, shape):
        return jax.random.uniform(k, shape, jnp.float32, -bound, bound)

    wih0 = u(keys[0], (INPUT_SIZE, HIDDEN_SIZE))
    whh0 = u(keys[1], (HIDDEN_SIZE, HIDDEN_SIZE))
    bih0 = u(keys[2], (1, HIDDEN_SIZE))
    bhh0 = u(keys[3], (1, HIDDEN_SIZE))
    wih1 = u(keys[4], (HIDDEN_SIZE, HIDDEN_SIZE))
    whh1 = u(keys[5], (HIDDEN_SIZE, HIDDEN_SIZE))
    bih1 = u(keys[6], (1, HIDDEN_SIZE))
    bhh1 = u(keys[7], (1, HIDDEN_SIZE))
    wfc = u(keys[8], (HIDDEN_SIZE, OUTPUT_SIZE))
    bfc = u(keys[9], (1, OUTPUT_SIZE))
    return (wih0, whh0, bih0, bhh0, wih1, whh1, bih1, bhh1, wfc, bfc)


def rnn_reference(x, params):
    """Pure-JAX reference mirroring nn.RNN(tanh, 2 layers, batch_first) + fc."""
    (wih0, whh0, bih0, bhh0,
     wih1, whh1, bih1, bhh1,
     wfc, bfc) = params
    b, t, _ = x.shape
    h0 = jnp.zeros((b, HIDDEN_SIZE), jnp.float32)
    h1 = jnp.zeros((b, HIDDEN_SIZE), jnp.float32)
    for i in range(t):
        x_t = x[:, i, :]
        h0 = jnp.tanh(x_t @ wih0 + bih0 + h0 @ whh0 + bhh0)
        h1 = jnp.tanh(h0 @ wih1 + bih1 + h1 @ whh1 + bhh1)
    return h1 @ wfc + bfc


if __name__ == "__main__":
    key = jax.random.PRNGKey(0)
    k_x, k_p = jax.random.split(key)

    batch, seq_len = 2, 8
    x = jax.random.normal(k_x, (batch, seq_len, INPUT_SIZE), jnp.float32)
    params = init_params(k_p)

    out = rnn_forward(x, params)
    out = jax.block_until_ready(out)

    ref = rnn_reference(x, params)
    assert out.shape == (batch, OUTPUT_SIZE), out.shape
    assert jnp.allclose(out, ref, atol=1e-5, rtol=1e-5), (out, ref)

    print("KERNEL_OK")
</pallas_src>

<mosaic_0001>
module attributes {stable_mosaic.version = 11 : i64} {
  func.func @_rnn_kernel(%arg0: memref<16x10xf32, #tpu.memory_space<vmem>>, %arg1: memref<10x32xf32, #tpu.memory_space<vmem>>, %arg2: memref<1x32xf32, #tpu.memory_space<vmem>>, %arg3: memref<64x64xf32, #tpu.memory_space<vmem>>, %arg4: memref<32x32xf32, #tpu.memory_space<vmem>>, %arg5: memref<1x32xf32, #tpu.memory_space<vmem>>, %arg6: memref<32x128xf32, #tpu.memory_space<vmem>>, %arg7: memref<1x128xf32, #tpu.memory_space<vmem>>, %arg8: memref<2x128xf32, #tpu.memory_space<vmem>>) attributes {dimension_semantics = [], scalar_prefetch = 0 : i64, scratch_operands = 0 : i64, tpu.core_type = #tpu.core_type<tc>} {
    %c0 = arith.constant 0 : index
    %c0_0 = arith.constant 0 : index
    %0 = vector.load %arg0[%c0, %c0_0] : memref<16x10xf32, #tpu.memory_space<vmem>>, vector<16x10xf32>
    %c0_1 = arith.constant 0 : index
    %c0_2 = arith.constant 0 : index
    %1 = vector.load %arg1[%c0_1, %c0_2] : memref<10x32xf32, #tpu.memory_space<vmem>>, vector<10x32xf32>
    %cst = arith.constant dense<0.000000e+00> : vector<16x32xf32>
    %2 = tpu.matmul %0, %1, %cst {dimension_numbers = #tpu.dot_dimension_numbers<[1], [0], [0], [1], [0, 0, 1, 1], [], []>} : vector<16x10xf32>, vector<10x32xf32>, vector<16x32xf32> -> vector<16x32xf32>
    %c0_3 = arith.constant 0 : index
    %c0_4 = arith.constant 0 : index
    %3 = vector.load %arg2[%c0_3, %c0_4] : memref<1x32xf32, #tpu.memory_space<vmem>>, vector<1x32xf32>
    %4 = vector.broadcast %3 : vector<1x32xf32> to vector<16x32xf32>
    %5 = arith.addf %2, %4 : vector<16x32xf32>
    %c0_5 = arith.constant 0 : index
    %c0_6 = arith.constant 0 : index
    %6 = vector.load %arg5[%c0_5, %c0_6] : memref<1x32xf32, #tpu.memory_space<vmem>>, vector<1x32xf32>
    %7 = vector.shape_cast %6 : vector<1x32xf32> to vector<1x32xf32>
    %8 = vector.broadcast %7 : vector<1x32xf32> to vector<2x32xf32>
    %cst_7 = arith.constant 0.000000e+00 : f32
    %9 = vector.broadcast %cst_7 : f32 to vector<2x64xf32>
    %c0_8 = arith.constant 0 : index
    %c0_9 = arith.constant 0 : index
    %10 = vector.load %arg3[%c0_8, %c0_9] : memref<64x64xf32, #tpu.memory_space<vmem>>, vector<64x64xf32>
    %cst_10 = arith.constant dense<0.000000e+00> : vector<2x64xf32>
    %11 = tpu.matmul %9, %10, %cst_10 {dimension_numbers = #tpu.dot_dimension_numbers<[1], [0], [0], [1], [0, 0, 1, 1], [], []>} : vector<2x64xf32>, vector<64x64xf32>, vector<2x64xf32> -> vector<2x64xf32>
    %12 = vector.extract_strided_slice %5 {offsets = [0, 0], sizes = [2, 32], strides = [1, 1]} : vector<16x32xf32> to vector<2x32xf32>
    %13 = vector.extract_strided_slice %11 {offsets = [0, 0], sizes = [2, 32], strides = [1, 1]} : vector<2x64xf32> to vector<2x32xf32>
    %14 = arith.addf %12, %13 : vector<2x32xf32>
    %15 = math.tanh %14 : vector<2x32xf32>
    %c0_11 = arith.constant 0 : index
    %c0_12 = arith.constant 0 : index
    %16 = vector.load %arg4[%c0_11, %c0_12] : memref<32x32xf32, #tpu.memory_space<vmem>>, vector<32x32xf32>
    %cst_13 = arith.constant dense<0.000000e+00> : vector<2x32xf32>
    %17 = tpu.matmul %15, %16, %cst_13 {dimension_numbers = #tpu.dot_dimension_numbers<[1], [0], [0], [1], [0, 0, 1, 1], [], []>} : vector<2x32xf32>, vector<32x32xf32>, vector<2x32xf32> -> vector<2x32xf32>
    %18 = vector.extract_strided_slice %11 {offsets = [0, 32], sizes = [2, 32], strides = [1, 1]} : vector<2x64xf32> to vector<2x32xf32>
    %19 = arith.addf %17, %18 : vector<2x32xf32>
    %20 = arith.addf %19, %8 : vector<2x32xf32>
    %21 = math.tanh %20 : vector<2x32xf32>
    %22 = tpu.concatenate %15, %21 in 1 : vector<2x32xf32>, vector<2x32xf32> -> vector<2x64xf32>
    %c0_14 = arith.constant 0 : index
    %c0_15 = arith.constant 0 : index
    %23 = vector.load %arg3[%c0_14, %c0_15] : memref<64x64xf32, #tpu.memory_space<vmem>>, vector<64x64xf32>
    %cst_16 = arith.constant dense<0.000000e+00> : vector<2x64xf32>
    %24 = tpu.matmul %22, %23, %cst_16 {dimension_numbers = #tpu.dot_dimension_numbers<[1], [0], [0], [1], [0, 0, 1, 1], [], []>} : vector<2x64xf32>, vector<64x64xf32>, vector<2x64xf32> -> vector<2x64xf32>
    %25 = vector.extract_strided_slice %5 {offsets = [2, 0], sizes = [2, 32], strides = [1, 1]} : vector<16x32xf32> to vector<2x32xf32>
    %26 = vector.extract_strided_slice %24 {offsets = [0, 0], sizes = [2, 32], strides = [1, 1]} : vector<2x64xf32> to vector<2x32xf32>
    %27 = arith.addf %25, %26 : vector<2x32xf32>
    %28 = math.tanh %27 : vector<2x32xf32>
    %c0_17 = arith.constant 0 : index
    %c0_18 = arith.constant 0 : index
    %29 = vector.load %arg4[%c0_17, %c0_18] : memref<32x32xf32, #tpu.memory_space<vmem>>, vector<32x32xf32>
    %cst_19 = arith.constant dense<0.000000e+00> : vector<2x32xf32>
    %30 = tpu.matmul %28, %29, %cst_19 {dimension_numbers = #tpu.dot_dimension_numbers<[1], [0], [0], [1], [0, 0, 1, 1], [], []>} : vector<2x32xf32>, vector<32x32xf32>, vector<2x32xf32> -> vector<2x32xf32>
    %31 = vector.extract_strided_slice %24 {offsets = [0, 32], sizes = [2, 32], strides = [1, 1]} : vector<2x64xf32> to vector<2x32xf32>
    %32 = arith.addf %30, %31 : vector<2x32xf32>
    %33 = arith.addf %32, %8 : vector<2x32xf32>
    %34 = math.tanh %33 : vector<2x32xf32>
    %35 = tpu.concatenate %28, %34 in 1 : vector<2x32xf32>, vector<2x32xf32> -> vector<2x64xf32>
    %c0_20 = arith.constant 0 : index
    %c0_21 = arith.constant 0 : index
    %36 = vector.load %arg3[%c0_20, %c0_21] : memref<64x64xf32, #tpu.memory_space<vmem>>, vector<64x64xf32>
    %cst_22 = arith.constant dense<0.000000e+00> : vector<2x64xf32>
    %37 = tpu.matmul %35, %36, %cst_22 {dimension_numbers = #tpu.dot_dimension_numbers<[1], [0], [0], [1], [0, 0, 1, 1], [], []>} : vector<2x64xf32>, vector<64x64xf32>, vector<2x64xf32> -> vector<2x64xf32>
    %38 = vector.extract_strided_slice %5 {offsets = [4, 0], sizes = [2, 32], strides = [1, 1]} : vector<16x32xf32> to vector<2x32xf32>
    %39 = vector.extract_strided_slice %37 {offsets = [0, 0], sizes = [2, 32], strides = [1, 1]} : vector<2x64xf32> to vector<2x32xf32>
    %40 = arith.addf %38, %39 : vector<2x32xf32>
    %41 = math.tanh %40 : vector<2x32xf32>
    %c0_23 = arith.constant 0 : index
    %c0_24 = arith.constant 0 : index
    %42 = vector.load %arg4[%c0_23, %c0_24] : memref<32x32xf32, #tpu.memory_space<vmem>>, vector<32x32xf32>
    %cst_25 = arith.constant dense<0.000000e+00> : vector<2x32xf32>
    %43 = tpu.matmul %41, %42, %cst_25 {dimension_numbers = #tpu.dot_dimension_numbers<[1], [0], [0], [1], [0, 0, 1, 1], [], []>} : vector<2x32xf32>, vector<32x32xf32>, vector<2x32xf32> -> vector<2x32xf32>
    %44 = vector.extract_strided_slice %37 {offsets = [0, 32], sizes = [2, 32], strides = [1, 1]} : vector<2x64xf32> to vector<2x32xf32>
    %45 = arith.addf %43, %44 : vector<2x32xf32>
    %46 = arith.addf %45, %8 : vector<2x32xf32>
    %47 = math.tanh %46 : vector<2x32xf32>
    %48 = tpu.concatenate %41, %47 in 1 : vector<2x32xf32>, vector<2x32xf32> -> vector<2x64xf32>
    %c0_26 = arith.constant 0 : index
    %c0_27 = arith.constant 0 : index
    %49 = vector.load %arg3[%c0_26, %c0_27] : memref<64x64xf32, #tpu.memory_space<vmem>>, vector<64x64xf32>
    %cst_28 = arith.constant dense<0.000000e+00> : vector<2x64xf32>
    %50 = tpu.matmul %48, %49, %cst_28 {dimension_numbers = #tpu.dot_dimension_numbers<[1], [0], [0], [1], [0, 0, 1, 1], [], []>} : vector<2x64xf32>, vector<64x64xf32>, vector<2x64xf32> -> vector<2x64xf32>
    %51 = vector.extract_strided_slice %5 {offsets = [6, 0], sizes = [2, 32], strides = [1, 1]} : vector<16x32xf32> to vector<2x32xf32>
    %52 = vector.extract_strided_slice %50 {offsets = [0, 0], sizes = [2, 32], strides = [1, 1]} : vector<2x64xf32> to vector<2x32xf32>
    %53 = arith.addf %51, %52 : vector<2x32xf32>
    %54 = math.tanh %53 : vector<2x32xf32>
    %c0_29 = arith.constant 0 : index
    %c0_30 = arith.constant 0 : index
    %55 = vector.load %arg4[%c0_29, %c0_30] : memref<32x32xf32, #tpu.memory_space<vmem>>, vector<32x32xf32>
    %cst_31 = arith.constant dense<0.000000e+00> : vector<2x32xf32>
    %56 = tpu.matmul %54, %55, %cst_31 {dimension_numbers = #tpu.dot_dimension_numbers<[1], [0], [0], [1], [0, 0, 1, 1], [], []>} : vector<2x32xf32>, vector<32x32xf32>, vector<2x32xf32> -> vector<2x32xf32>
    %57 = vector.extract_strided_slice %50 {offsets = [0, 32], sizes = [2, 32], strides = [1, 1]} : vector<2x64xf32> to vector<2x32xf32>
    %58 = arith.addf %56, %57 : vector<2x32xf32>
    %59 = arith.addf %58, %8 : vector<2x32xf32>
    %60 = math.tanh %59 : vector<2x32xf32>
    %61 = tpu.concatenate %54, %60 in 1 : vector<2x32xf32>, vector<2x32xf32> -> vector<2x64xf32>
    %c0_32 = arith.constant 0 : index
    %c0_33 = arith.constant 0 : index
    %62 = vector.load %arg3[%c0_32, %c0_33] : memref<64x64xf32, #tpu.memory_space<vmem>>, vector<64x64xf32>
    %cst_34 = arith.constant dense<0.000000e+00> : vector<2x64xf32>
    %63 = tpu.matmul %61, %62, %cst_34 {dimension_numbers = #tpu.dot_dimension_numbers<[1], [0], [0], [1], [0, 0, 1, 1], [], []>} : vector<2x64xf32>, vector<64x64xf32>, vector<2x64xf32> -> vector<2x64xf32>
    %64 = vector.extract_strided_slice %5 {offsets = [8, 0], sizes = [2, 32], strides = [1, 1]} : vector<16x32xf32> to vector<2x32xf32>
    %65 = vector.extract_strided_slice %63 {offsets = [0, 0], sizes = [2, 32], strides = [1, 1]} : vector<2x64xf32> to vector<2x32xf32>
    %66 = arith.addf %64, %65 : vector<2x32xf32>
    %67 = math.tanh %66 : vector<2x32xf32>
    %c0_35 = arith.constant 0 : index
    %c0_36 = arith.constant 0 : index
    %68 = vector.load %arg4[%c0_35, %c0_36] : memref<32x32xf32, #tpu.memory_space<vmem>>, vector<32x32xf32>
    %cst_37 = arith.constant dense<0.000000e+00> : vector<2x32xf32>
    %69 = tpu.matmul %67, %68, %cst_37 {dimension_numbers = #tpu.dot_dimension_numbers<[1], [0], [0], [1], [0, 0, 1, 1], [], []>} : vector<2x32xf32>, vector<32x32xf32>, vector<2x32xf32> -> vector<2x32xf32>
    %70 = vector.extract_strided_slice %63 {offsets = [0, 32], sizes = [2, 32], strides = [1, 1]} : vector<2x64xf32> to vector<2x32xf32>
    %71 = arith.addf %69, %70 : vector<2x32xf32>
    %72 = arith.addf %71, %8 : vector<2x32xf32>
    %73 = math.tanh %72 : vector<2x32xf32>
    %74 = tpu.concatenate %67, %73 in 1 : vector<2x32xf32>, vector<2x32xf32> -> vector<2x64xf32>
    %c0_38 = arith.constant 0 : index
    %c0_39 = arith.constant 0 : index
    %75 = vector.load %arg3[%c0_38, %c0_39] : memref<64x64xf32, #tpu.memory_space<vmem>>, vector<64x64xf32>
    %cst_40 = arith.constant dense<0.000000e+00> : vector<2x64xf32>
    %76 = tpu.matmul %74, %75, %cst_40 {dimension_numbers = #tpu.dot_dimension_numbers<[1], [0], [0], [1], [0, 0, 1, 1], [], []>} : vector<2x64xf32>, vector<64x64xf32>, vector<2x64xf32> -> vector<2x64xf32>
    %77 = vector.extract_strided_slice %5 {offsets = [10, 0], sizes = [2, 32], strides = [1, 1]} : vector<16x32xf32> to vector<2x32xf32>
    %78 = vector.extract_strided_slice %76 {offsets = [0, 0], sizes = [2, 32], strides = [1, 1]} : vector<2x64xf32> to vector<2x32xf32>
    %79 = arith.addf %77, %78 : vector<2x32xf32>
    %80 = math.tanh %79 : vector<2x32xf32>
    %c0_41 = arith.constant 0 : index
    %c0_42 = arith.constant 0 : index
    %81 = vector.load %arg4[%c0_41, %c0_42] : memref<32x32xf32, #tpu.memory_space<vmem>>, vector<32x32xf32>
    %cst_43 = arith.constant dense<0.000000e+00> : vector<2x32xf32>
    %82 = tpu.matmul %80, %81, %cst_43 {dimension_numbers = #tpu.dot_dimension_numbers<[1], [0], [0], [1], [0, 0, 1, 1], [], []>} : vector<2x32xf32>, vector<32x32xf32>, vector<2x32xf32> -> vector<2x32xf32>
    %83 = vector.extract_strided_slice %76 {offsets = [0, 32], sizes = [2, 32], strides = [1, 1]} : vector<2x64xf32> to vector<2x32xf32>
    %84 = arith.addf %82, %83 : vector<2x32xf32>
    %85 = arith.addf %84, %8 : vector<2x32xf32>
    %86 = math.tanh %85 : vector<2x32xf32>
    %87 = tpu.concatenate %80, %86 in 1 : vector<2x32xf32>, vector<2x32xf32> -> vector<2x64xf32>
    %c0_44 = arith.constant 0 : index
    %c0_45 = arith.constant 0 : index
    %88 = vector.load %arg3[%c0_44, %c0_45] : memref<64x64xf32, #tpu.memory_space<vmem>>, vector<64x64xf32>
    %cst_46 = arith.constant dense<0.000000e+00> : vector<2x64xf32>
    %89 = tpu.matmul %87, %88, %cst_46 {dimension_numbers = #tpu.dot_dimension_numbers<[1], [0], [0], [1], [0, 0, 1, 1], [], []>} : vector<2x64xf32>, vector<64x64xf32>, vector<2x64xf32> -> vector<2x64xf32>
    %90 = vector.extract_strided_slice %5 {offsets = [12, 0], sizes = [2, 32], strides = [1, 1]} : vector<16x32xf32> to vector<2x32xf32>
    %91 = vector.extract_strided_slice %89 {offsets = [0, 0], sizes = [2, 32], strides = [1, 1]} : vector<2x64xf32> to vector<2x32xf32>
    %92 = arith.addf %90, %91 : vector<2x32xf32>
    %93 = math.tanh %92 : vector<2x32xf32>
    %c0_47 = arith.constant 0 : index
    %c0_48 = arith.constant 0 : index
    %94 = vector.load %arg4[%c0_47, %c0_48] : memref<32x32xf32, #tpu.memory_space<vmem>>, vector<32x32xf32>
    %cst_49 = arith.constant dense<0.000000e+00> : vector<2x32xf32>
    %95 = tpu.matmul %93, %94, %cst_49 {dimension_numbers = #tpu.dot_dimension_numbers<[1], [0], [0], [1], [0, 0, 1, 1], [], []>} : vector<2x32xf32>, vector<32x32xf32>, vector<2x32xf32> -> vector<2x32xf32>
    %96 = vector.extract_strided_slice %89 {offsets = [0, 32], sizes = [2, 32], strides = [1, 1]} : vector<2x64xf32> to vector<2x32xf32>
    %97 = arith.addf %95, %96 : vector<2x32xf32>
    %98 = arith.addf %97, %8 : vector<2x32xf32>
    %99 = math.tanh %98 : vector<2x32xf32>
    %100 = tpu.concatenate %93, %99 in 1 : vector<2x32xf32>, vector<2x32xf32> -> vector<2x64xf32>
    %c0_50 = arith.constant 0 : index
    %c0_51 = arith.constant 0 : index
    %101 = vector.load %arg3[%c0_50, %c0_51] : memref<64x64xf32, #tpu.memory_space<vmem>>, vector<64x64xf32>
    %cst_52 = arith.constant dense<0.000000e+00> : vector<2x64xf32>
    %102 = tpu.matmul %100, %101, %cst_52 {dimension_numbers = #tpu.dot_dimension_numbers<[1], [0], [0], [1], [0, 0, 1, 1], [], []>} : vector<2x64xf32>, vector<64x64xf32>, vector<2x64xf32> -> vector<2x64xf32>
    %103 = vector.extract_strided_slice %5 {offsets = [14, 0], sizes = [2, 32], strides = [1, 1]} : vector<16x32xf32> to vector<2x32xf32>
    %104 = vector.extract_strided_slice %102 {offsets = [0, 0], sizes = [2, 32], strides = [1, 1]} : vector<2x64xf32> to vector<2x32xf32>
    %105 = arith.addf %103, %104 : vector<2x32xf32>
    %106 = math.tanh %105 : vector<2x32xf32>
    %c0_53 = arith.constant 0 : index
    %c0_54 = arith.constant 0 : index
    %107 = vector.load %arg4[%c0_53, %c0_54] : memref<32x32xf32, #tpu.memory_space<vmem>>, vector<32x32xf32>
    %cst_55 = arith.constant dense<0.000000e+00> : vector<2x32xf32>
    %108 = tpu.matmul %106, %107, %cst_55 {dimension_numbers = #tpu.dot_dimension_numbers<[1], [0], [0], [1], [0, 0, 1, 1], [], []>} : vector<2x32xf32>, vector<32x32xf32>, vector<2x32xf32> -> vector<2x32xf32>
    %109 = vector.extract_strided_slice %102 {offsets = [0, 32], sizes = [2, 32], strides = [1, 1]} : vector<2x64xf32> to vector<2x32xf32>
    %110 = arith.addf %108, %109 : vector<2x32xf32>
    %111 = arith.addf %110, %8 : vector<2x32xf32>
    %112 = math.tanh %111 : vector<2x32xf32>
    %113 = tpu.concatenate %106, %112 in 1 : vector<2x32xf32>, vector<2x32xf32> -> vector<2x64xf32>
    %114 = vector.extract_strided_slice %113 {offsets = [0, 32], sizes = [2, 32], strides = [1, 1]} : vector<2x64xf32> to vector<2x32xf32>
    %c0_56 = arith.constant 0 : index
    %c0_57 = arith.constant 0 : index
    %115 = vector.load %arg6[%c0_56, %c0_57] : memref<32x128xf32, #tpu.memory_space<vmem>>, vector<32x128xf32>
    %cst_58 = arith.constant dense<0.000000e+00> : vector<2x128xf32>
    %116 = tpu.matmul %114, %115, %cst_58 {dimension_numbers = #tpu.dot_dimension_numbers<[1], [0], [0], [1], [0, 0, 1, 1], [], []>} : vector<2x32xf32>, vector<32x128xf32>, vector<2x128xf32> -> vector<2x128xf32>
    %c0_59 = arith.constant 0 : index
    %c0_60 = arith.constant 0 : index
    %117 = vector.load %arg7[%c0_59, %c0_60] : memref<1x128xf32, #tpu.memory_space<vmem>>, vector<1x128xf32>
    %118 = vector.broadcast %117 : vector<1x128xf32> to vector<2x128xf32>
    %119 = arith.addf %116, %118 : vector<2x128xf32>
    %c0_61 = arith.constant 0 : index
    %c0_62 = arith.constant 0 : index
    %120 = vector.load %arg8[%c0_61, %c0_62] : memref<2x128xf32, #tpu.memory_space<vmem>>, vector<2x128xf32>
    tpu.vector_store %arg8[%c0_61, %c0_62], %119 {strides = array<i32>} : memref<2x128xf32, #tpu.memory_space<vmem>>, vector<2x128xf32>,
    return
  }
}

</mosaic_0001>

<bundles_post_ra>
// kernel: rnn_forward.1
= control target key start
LH: loop header
LB: loop body
LE: loop exit
PB: predicated region body
PF: predicated region fallthrough
CT: control target
= control target key end

     0   :  { %vm48_vm0 = vcmask 1041408   ;;  %v2171_v3 = vmov 0.0|0.0   ;;  %vm2172_vm1 = vmmov 1   ;;  %vm41_vm3 = vcmask 80896   ;;  %s2514_s0 = inlined_call_operand.vmem [shape: f32[16,10], index: 0, kind: input, shape index: {}]   ;;  %s2515_s1 = inlined_call_operand.vmem [shape: f32[10,32], index: 1, kind: input, shape index: {}]   ;;  %s2516_s2 = inlined_call_operand.vmem [shape: f32[1,32], index: 2, kind: input, shape index: {}]   ;;  %s2517_s3 = inlined_call_operand.vmem [shape: f32[64,64], index: 3, kind: input, shape index: {}]   ;;  %s2518_s4 = inlined_call_operand.vmem [shape: f32[32,32], index: 4, kind: input, shape index: {}]   ;;  %s2519_s5 = inlined_call_operand.vmem [shape: f32[1,32], index: 5, kind: input, shape index: {}]   ;;  %s2520_s6 = inlined_call_operand.vmem [shape: f32[32,128], index: 6, kind: input, shape index: {}]   ;;  %s2521_s7 = inlined_call_operand.vmem [shape: f32[1,128], index: 7, kind: input, shape index: {}]   ;;  %s2522_s8 = inlined_call_operand.hbm [shape: f32[2,128], index: 8, kind: output, shape index: {}]  }
   0x1   :  { %v134_v0 = vld [vmem:[%s2517_s3] sm:$0xff]  ;;  %v135_v1 = vld [vmem:[%s2517_s3 + $0x8] sm:$0xff]  ;;  %v136_v2 = vld [vmem:[%s2517_s3 + $0x10] sm:$0xff]  ;;  %1958 = vmatprep.subr.bf16.mxu1 %v2171_v3  ;;  %vm2173_vm4 = vmmov 0   ;;  %v2174_v11 = vmov 0.0  }
   0x2   :  { %v2233_v4 = vpack.c.bf16 %v135_v1, %v134_v0  ;;  %v137_v5 = vld [vmem:[%s2517_s3 + $0x18] sm:$0xff]  ;;  %v32_v6 = vld [vmem:[%s2515_s1] sm:$0xff]  ;;  %v33_v7 = vld [vmem:[%s2515_s1 + $0x8] sm:$0x3]  ;;  %1717 = vmatprep.mubr.msk.f32.mxu1 %vm2173_vm4, %v2174_v11 }
   0x3   :  { %v1952_v8 = vpack.c.bf16 %v33_v7, %v32_v6  ;;  %vm1953_vm2 = vmpackc.low %vm48_vm0, %vm2172_vm1  ;;  %v2245_v9 = vpack.c.bf16 %v137_v5, %v136_v2  ;;  %v30_v10 = vld [vmem:[%s2514_s0] sm:$0xff]  ;;  %v139_v13 = vld [vmem:[%s2517_s3 + $0x28] sm:$0xff] }
   0x4   :  { %1960 = vmatpush3.bf16.msra.mxu1 %v2233_v4  ;;  %v138_v12 = vld [vmem:[%s2517_s3 + $0x20] sm:$0xff] }
   0x5   :  { %1961 = vmatprep.subr.bf16.mxu1 %v2171_v3  ;;  %1954 = vmatprep.subr.msk.bf16.mxu0 %vm1953_vm2, %v1952_v8 }
   0x6   :  { %13 = vsyncpa [#allocation3], 0  ;;  %1957 = vmatpush3.bf16.msk.msra.mxu0 %vm1953_vm2, %v1952_v8  ;;  %1698 = vmatprep.mubr.msk.f32.mxu0 %vm41_vm3, %v30_v10  ;;  %v31_v14 = vld [vmem:[%s2514_s0 + $0x8] sm:$0xff]  ;;  %v2265_v15 = vpack.c.bf16 %v139_v13, %v138_v12  ;;  %v140_v16 = vld [vmem:[%s2517_s3 + $0x30] sm:$0xff]  ;;  %s2175_s13 = smov 96   ;;  %vm226_vm5 = vcmask 261120  }
   0x7   :  { %1970 = vmatprep.subr.bf16.mxu0 %v2171_v3  ;;  %v141_v17 = vld [vmem:[%s2517_s3 + $0x38] sm:$0xff]  ;;  %v218_v19 = vld [vmem:[%s2518_s4] sm:$0xff]  ;;  %v219_v20 = vld [vmem:[%s2518_s4 + $0x8] sm:$0xff]  ;;  %s2176_s15 = smov 32   ;;  %vm142_vm6 = vcmask 523264   ;;  %s2177_s23 = smov [#allocation2]  }
   0x8   :  { %1963 = vmatpush3.bf16.msra.mxu1 %v2245_v9  ;;  %v2278_v18 = vpack.c.bf16 %v141_v17, %v140_v16  ;;  %v220_v21 = vld [vmem:[%s2518_s4 + $0x10] sm:$0xff]  ;;  %v2295_v22 = vpack.c.bf16 %v219_v20, %v218_v19  ;;  %v221_v23 = vld [vmem:[%s2518_s4 + $0x18] sm:$0xff]  ;;  %v1551_v25 = vld [vmem:[%s2516_s2] ss:$0 sm:$0xff]  ;;  %s1543_s24 = sshll.u32 %s2177_s23, 4  ;;  %s1544_s24 = int_to_ptr.vmem [resolvable:$true] %s1543_s24 }
   0x9   :  { %1964 = vmatprep.subr.bf16.mxu1 %v2171_v3  ;;  %1699 = vmatmul.mubr.msk.f32.vlgmr.msra.gmra.mrb[0].mxu0 %vm41_vm3, %v31_v14  ;;  %v2301_v24 = vpack.c.bf16 %v221_v23, %v220_v21  ;;  %v2333_v35 = vld [vmem:[%s2519_s5] ss:$0 sm:$0xff]  ;;  %s2147_s25 = scalar_lea.vmem %s1544_s24, 32  ;;  %p2152_p1 = scmp.lt.s32.totalorder %s1544_s24, %s1544_s24 }
   0xa   :  { %1728 = vmatprep.mubr.msk.f32.mxu0 %vm2173_vm4, %v2174_v11  ;;  %1972 = vmatpush3.bf16.msra.mxu0 %v2295_v22  ;;  %p2148_p0 = scmp.ne.s32.totalorder %s1544_s24, %s2147_s25  ;;  %p2153_p2 = scmp.lt.s32.totalorder %s2147_s25, %s2147_s25 }
   0xb   :  { %1973 = vmatprep.subr.bf16.mxu0 %v2171_v3 }
   0xc   :  { %1966 = vmatpush3.bf16.msra.mxu1 %v2265_v15  ;;  %p2154_p3 = por %p2153_p2, %p2152_p1 }
   0xd   :  { %1967 = vmatprep.subr.bf16.mxu1 %v2171_v3 }
   0xe   :  { %1975 = vmatpush3.bf16.msra.mxu0 %v2301_v24  ;;  %p2155_p4 = pnand %p2154_p3, %p2148_p0 }
   0xf   :  { %1976 = vmatprep.subr.bf16.mxu0 %v2171_v3 }
  0x10   :  { %1969 = vmatpush3.bf16.msra.mxu1 %v2278_v18 }
  0x11   :  { %1988 = vmatprep.subr.bf16.mxu1 %v2171_v3 }
  0x13   :  { %1718 = vmatmul.mubr.f32.vlgmr.msra.gmra.mrb[0].mxu1 %v2174_v11 }
  0x14   :  { %1758 = vmatprep.mubr.msk.f32.mxu1 %vm2173_vm4, %v2174_v11  ;;  %1990 = vmatpush3.bf16.msra.mxu1 %v2295_v22 }
  0x15   :  { %1991 = vmatprep.subr.bf16.mxu1 %v2171_v3 }
  0x18   :  { %1993 = vmatpush3.bf16.msra.mxu1 %v2301_v24 }
  0x19   :  { %1994 = vmatprep.subr.bf16.mxu1 %v2171_v3 }
  0xdc   :  { %v1700_v26 = vpop.f32.mrb[0].mxu0 }
  0xdd   :  { %v2313_v27 = vadd.f32 %v1700_v26, %v1551_v25  ;;  %v118_v28 = vpop.f32.mrb[1].mxu0 }
  0xde   :  { %v2315_v29 = vadd.f32 %v1551_v25, %v118_v28 }
  0xe6   :  { %v212_v30 = vpop.f32.mrb[0].mxu1 }
  0xe7   :  { %v216_v31 = vadd.f32 %v212_v30, %v2315_v29  ;;  %223 = vrot.lane.b32.xlu0 %v212_v30, %s2175_s13  ;;  %v1719_v32 = vpop.f32.mrb[1].mxu1 }
  0xe9   :  { %2115 = vtanh.f32 %v216_v31 }
  0xf3   :  { %v2116_v33 = vpop.eup %2115 }
  0xf4   :  { %1729 = vmatmul.mubr.msk.f32.vlgmr.msra.gmra.mrb[2].mxu0 %vm226_vm5, %v2116_v33 }
  0xf5   :  { %1978 = vmatpush3.bf16.msra.mxu0 %v2233_v4  ;;  %1747 = vmatprep.mubr.msk.f32.mxu0 %vm2173_vm4, %v2174_v11 }
  0xf6   :  { %1979 = vmatprep.subr.bf16.mxu0 %v2171_v3 }
  0xf9   :  { %1981 = vmatpush3.bf16.msra.mxu0 %v2245_v9 }
  0xfa   :  { %1982 = vmatprep.subr.bf16.mxu0 %v2171_v3 }
  0xfd   :  { %1984 = vmatpush3.bf16.msra.mxu0 %v2265_v15 }
  0xfe   :  { %1985 = vmatprep.subr.bf16.mxu0 %v2171_v3 }
 0x101   :  { %1987 = vmatpush3.bf16.msra.mxu0 %v2278_v18 }
 0x102   :  { %2006 = vmatprep.subr.bf16.mxu0 %v2171_v3 }
 0x159   :  { %v224_v34 = vpop.permute.xlu0 %223 }
 0x1c7   :  { %v296_v36 = vpop.f32.mrb[2].mxu0 }
 0x1c8   :  { %v297_v37 = vadd.f32 %v296_v36, %v224_v34  ;;  %v1730_v38 = vpop.f32.mrb[3].mxu0 }
 0x1ca   :  { %v300_v39 = vadd.f32 %v2333_v35, %v297_v37 }
 0x1cc   :  { %2117 = vtanh.f32 %v300_v39 }
 0x1d6   :  { %v2118_v40 = vpop.eup %2117 }
 0x1d7   :  { %303 = vrot.lane.b32.xlu0 %v2118_v40, %s2176_s15 }
 0x249   :  { %v304_v41 = vpop.permute.xlu0 %303 }
 0x24a   :  { %v306_v42 = vsel %vm226_vm5, %v2116_v33, %v304_v41 }
 0x24b   :  { %1748 = vmatmul.mubr.msk.f32.vlgmr.msra.gmra.mrb[4].mxu0 %vm142_vm6, %v306_v42 }
 0x24c   :  { %2008 = vmatpush3.bf16.msra.mxu0 %v2295_v22  ;;  %1788 = vmatprep.mubr.msk.f32.mxu0 %vm2173_vm4, %v2174_v11 }
 0x24d   :  { %2009 = vmatprep.subr.bf16.mxu0 %v2171_v3 }
 0x250   :  { %2011 = vmatpush3.bf16.msra.mxu0 %v2301_v24 }
 0x251   :  { %2012 = vmatprep.subr.bf16.mxu0 %v2171_v3 }
 0x31e   :  { %v376_v43 = vpop.f32.mrb[4].mxu0 }
 0x31f   :  { %v381_v44 = vrot.slane %v376_v43, 6  ;;  %387 = vrot.lane.b32.xlu1 %v376_v43, %s2175_s13  ;;  %v1749_v45 = vpop.f32.mrb[5].mxu0 }
 0x321   :  { %v383_v46 = vadd.f32 %v381_v44, %v2315_v29 }
 0x323   :  { %2119 = vtanh.f32 %v383_v46 }
 0x32d   :  { %v2120_v47 = vpop.eup %2119 }
 0x32e   :  { %v386_v48 = vrot.slane %v2120_v47, 2 }
 0x330   :  { %1759 = vmatmul.mubr.msk.f32.vlgmr.msra.gmra.mrb[2].mxu1 %vm226_vm5, %v386_v48 }
 0x331   :  { %1996 = vmatpush3.bf16.msra.mxu1 %v2233_v4  ;;  %1777 = vmatprep.mubr.msk.f32.mxu1 %vm2173_vm4, %v2174_v11 }
 0x332   :  { %1997 = vmatprep.subr.bf16.mxu1 %v2171_v3 }
 0x335   :  { %1999 = vmatpush3.bf16.msra.mxu1 %v2245_v9 }
 0x336   :  { %2000 = vmatprep.subr.bf16.mxu1 %v2171_v3 }
 0x339   :  { %2002 = vmatpush3.bf16.msra.mxu1 %v2265_v15 }
 0x33a   :  { %2003 = vmatprep.subr.bf16.mxu1 %v2171_v3 }
 0x33d   :  { %2005 = vmatpush3.bf16.msra.mxu1 %v2278_v18 }
 0x33e   :  { %2024 = vmatprep.subr.bf16.mxu1 %v2171_v3 }
 0x391   :  { %v388_v49 = vpop.permute.xlu1 %387 }
 0x403   :  { %v458_v50 = vpop.f32.mrb[2].mxu1 }
 0x404   :  { %v459_v51 = vadd.f32 %v458_v50, %v388_v49  ;;  %v1760_v52 = vpop.f32.mrb[3].mxu1 }
 0x406   :  { %v462_v53 = vadd.f32 %v2333_v35, %v459_v51 }
 0x408   :  { %2121 = vtanh.f32 %v462_v53 }
 0x412   :  { %v2122_v54 = vpop.eup %2121 }
 0x413   :  { %v465_v55 = vrot.slane %v2122_v54, 6 }
 0x415   :  { %466 = vrot.lane.b32.xlu1 %v465_v55, %s2176_s15 }
 0x487   :  { %v467_v56 = vpop.permute.xlu1 %466 }
 0x488   :  { %v469_v57 = vsel %vm226_vm5, %v2120_v47, %v467_v56 }
 0x489   :  { %v471_v58 = vrot.slane %v469_v57, 2 }
 0x48b   :  { %1778 = vmatmul.mubr.msk.f32.vlgmr.msra.gmra.mrb[4].mxu1 %vm142_vm6, %v471_v58 }
 0x48c   :  { %2026 = vmatpush3.bf16.msra.mxu1 %v2295_v22  ;;  %1818 = vmatprep.mubr.msk.f32.mxu1 %vm2173_vm4, %v2174_v11 }
 0x48d   :  { %2027 = vmatprep.subr.bf16.mxu1 %v2171_v3 }
 0x490   :  { %2029 = vmatpush3.bf16.msra.mxu1 %v2301_v24 }
 0x491   :  { %2030 = vmatprep.subr.bf16.mxu1 %v2171_v3 }
 0x55e   :  { %v540_v59 = vpop.f32.mrb[4].mxu1 }
 0x55f   :  { %v545_v60 = vrot.slane %v540_v59, 4  ;;  %551 = vrot.lane.b32.xlu0 %v540_v59, %s2175_s13  ;;  %v1779_v61 = vpop.f32.mrb[5].mxu1 }
 0x561   :  { %v547_v62 = vadd.f32 %v545_v60, %v2315_v29 }
 0x563   :  { %2123 = vtanh.f32 %v547_v62 }
 0x56d   :  { %v2124_v63 = vpop.eup %2123 }
 0x56e   :  { %v550_v0 = vrot.slane %v2124_v63, 4 }
 0x570   :  { %1789 = vmatmul.mubr.msk.f32.vlgmr.msra.gmra.mrb[6].mxu0 %vm226_vm5, %v550_v0 }
 0x571   :  { %2014 = vmatpush3.bf16.msra.mxu0 %v2233_v4  ;;  %1807 = vmatprep.mubr.msk.f32.mxu0 %vm2173_vm4, %v2174_v11 }
 0x572   :  { %2015 = vmatprep.subr.bf16.mxu0 %v2171_v3 }
 0x575   :  { %2017 = vmatpush3.bf16.msra.mxu0 %v2245_v9 }
 0x576   :  { %2018 = vmatprep.subr.bf16.mxu0 %v2171_v3 }
 0x579   :  { %2020 = vmatpush3.bf16.msra.mxu0 %v2265_v15 }
 0x57a   :  { %2021 = vmatprep.subr.bf16.mxu0 %v2171_v3 }
 0x57d   :  { %2023 = vmatpush3.bf16.msra.mxu0 %v2278_v18 }
 0x57e   :  { %2042 = vmatprep.subr.bf16.mxu0 %v2171_v3 }
 0x5d1   :  { %v552_v1 = vpop.permute.xlu0 %551 }
 0x643   :  { %v622_v2 = vpop.f32.mrb[6].mxu0 }
 0x644   :  { %v623_v5 = vadd.f32 %v622_v2, %v552_v1  ;;  %v1790_v6 = vpop.f32.mrb[7].mxu0 }
 0x646   :  { %v626_v7 = vadd.f32 %v2333_v35, %v623_v5 }
 0x648   :  { %2125 = vtanh.f32 %v626_v7 }
 0x652   :  { %v2126_v8 = vpop.eup %2125 }
 0x653   :  { %v629_v10 = vrot.slane %v2126_v8, 4 }
 0x655   :  { %630 = vrot.lane.b32.xlu1 %v629_v10, %s2176_s15 }
 0x6c7   :  { %v631_v12 = vpop.permute.xlu1 %630 }
 0x6c8   :  { %v633_v13 = vsel %vm226_vm5, %v2124_v63, %v631_v12 }
 0x6c9   :  { %v635_v14 = vrot.slane %v633_v13, 4 }
 0x6cb   :  { %1808 = vmatmul.mubr.msk.f32.vlgmr.msra.gmra.mrb[8].mxu0 %vm142_vm6, %v635_v14 }
 0x6cc   :  { %2044 = vmatpush3.bf16.msra.mxu0 %v2295_v22  ;;  %1848 = vmatprep.mubr.msk.f32.mxu0 %vm2173_vm4, %v2174_v11 }
 0x6cd   :  { %2045 = vmatprep.subr.bf16.mxu0 %v2171_v3 }
 0x6d0   :  { %2047 = vmatpush3.bf16.msra.mxu0 %v2301_v24 }
 0x6d1   :  { %2048 = vmatprep.subr.bf16.mxu0 %v2171_v3 }
 0x79e   :  { %v704_v16 = vpop.f32.mrb[8].mxu0 }
 0x79f   :  { %v709_v17 = vrot.slane %v704_v16, 2  ;;  %715 = vrot.lane.b32.xlu0 %v704_v16, %s2175_s13  ;;  %v1809_v19 = vpop.f32.mrb[9].mxu0 }
 0x7a1   :  { %v711_v20 = vadd.f32 %v709_v17, %v2315_v29 }
 0x7a3   :  { %2127 = vtanh.f32 %v711_v20 }
 0x7ad   :  { %v2128_v21 = vpop.eup %2127 }
 0x7ae   :  { %v714_v23 = vrot.slane %v2128_v21, 6 }
 0x7b0   :  { %1819 = vmatmul.mubr.msk.f32.vlgmr.msra.gmra.mrb[6].mxu1 %vm226_vm5, %v714_v23 }
 0x7b1   :  { %2032 = vmatpush3.bf16.msra.mxu1 %v2233_v4  ;;  %1837 = vmatprep.mubr.msk.f32.mxu1 %vm2173_vm4, %v2174_v11 }
 0x7b2   :  { %2033 = vmatprep.subr.bf16.mxu1 %v2171_v3 }
 0x7b5   :  { %2035 = vmatpush3.bf16.msra.mxu1 %v2245_v9 }
 0x7b6   :  { %2036 = vmatprep.subr.bf16.mxu1 %v2171_v3 }
 0x7b9   :  { %2038 = vmatpush3.bf16.msra.mxu1 %v2265_v15 }
 0x7ba   :  { %2039 = vmatprep.subr.bf16.mxu1 %v2171_v3 }
 0x7bd   :  { %2041 = vmatpush3.bf16.msra.mxu1 %v2278_v18 }
 0x7be   :  { %2060 = vmatprep.subr.bf16.mxu1 %v2171_v3 }
 0x811   :  { %v716_v25 = vpop.permute.xlu0 %715 }
 0x883   :  { %v786_v26 = vpop.f32.mrb[6].mxu1 }
 0x884   :  { %v787_v28 = vadd.f32 %v786_v26, %v716_v25  ;;  %v1820_v29 = vpop.f32.mrb[7].mxu1 }
 0x886   :  { %v790_v30 = vadd.f32 %v2333_v35, %v787_v28 }
 0x888   :  { %2129 = vtanh.f32 %v790_v30 }
 0x892   :  { %v2130_v31 = vpop.eup %2129 }
 0x893   :  { %v793_v32 = vrot.slane %v2130_v31, 2  ;;  %v1449_v31 = vld [vmem:[%s2520_s6] sm:$0xff] }
 0x895   :  { %794 = vrot.lane.b32.xlu1 %v793_v32, %s2176_s15  ;;  %v1451_v32 = vld [vmem:[%s2520_s6 + $0x10] sm:$0xff] }
 0x907   :  { %v795_v33 = vpop.permute.xlu1 %794 }
 0x908   :  { %v797_v34 = vsel %vm226_vm5, %v2128_v21, %v795_v33  ;;  %v1452_v33 = vld [vmem:[%s2520_s6 + $0x18] sm:$0xff] }
 0x909   :  { %v799_v36 = vrot.slane %v797_v34, 6 }
 0x90b   :  { %1838 = vmatmul.mubr.msk.f32.vlgmr.msra.gmra.mrb[8].mxu1 %vm142_vm6, %v799_v36 }
 0x90c   :  { %2062 = vmatpush3.bf16.msra.mxu1 %v2295_v22  ;;  %1878 = vmatprep.mubr.msk.f32.mxu1 %vm2173_vm4, %v2174_v11 }
 0x90d   :  { %2063 = vmatprep.subr.bf16.mxu1 %v2171_v3 }
 0x910   :  { %2065 = vmatpush3.bf16.msra.mxu1 %v2301_v24 }
 0x911   :  { %2066 = vmatprep.subr.bf16.mxu1 %v2171_v3 }
 0x9de   :  { %v868_v37 = vpop.f32.mrb[8].mxu1 }
 0x9df   :  { %v872_v38 = vadd.f32 %v868_v37, %v2313_v27  ;;  %875 = vrot.lane.b32.xlu0 %v868_v37, %s2175_s13  ;;  %v1839_v39 = vpop.f32.mrb[9].mxu1 }
 0x9e1   :  { %2131 = vtanh.f32 %v872_v38 }
 0x9eb   :  { %v2132_v40 = vpop.eup %2131 }
 0x9ec   :  { %1849 = vmatmul.mubr.msk.f32.vlgmr.msra.gmra.mrb[10].mxu0 %vm226_vm5, %v2132_v40 }
 0x9ed   :  { %2050 = vmatpush3.bf16.msra.mxu0 %v2233_v4  ;;  %1867 = vmatprep.mubr.msk.f32.mxu0 %vm2173_vm4, %v2174_v11 }
 0x9ee   :  { %2051 = vmatprep.subr.bf16.mxu0 %v2171_v3 }
 0x9f1   :  { %2053 = vmatpush3.bf16.msra.mxu0 %v2245_v9 }
 0x9f2   :  { %2054 = vmatprep.subr.bf16.mxu0 %v2171_v3 }
 0x9f5   :  { %2056 = vmatpush3.bf16.msra.mxu0 %v2265_v15 }
 0x9f6   :  { %2057 = vmatprep.subr.bf16.mxu0 %v2171_v3 }
 0x9f9   :  { %2059 = vmatpush3.bf16.msra.mxu0 %v2278_v18 }
 0x9fa   :  { %2078 = vmatprep.subr.bf16.mxu0 %v2171_v3 }
 0xa51   :  { %v876_v41 = vpop.permute.xlu0 %875 }
 0xabf   :  { %v947_v42 = vpop.f32.mrb[10].mxu0 }
 0xac0   :  { %v948_v43 = vadd.f32 %v947_v42, %v876_v41  ;;  %v1850_v44 = vpop.f32.mrb[11].mxu0  ;;  %v1571_v41 = vld [vmem:[%s2521_s7] ss:$0 sm:$0xff] }
 0xac2   :  { %v951_v45 = vadd.f32 %v2333_v35, %v948_v43 }
 0xac4   :  { %2133 = vtanh.f32 %v951_v45 }
 0xace   :  { %v2134_v46 = vpop.eup %2133 }
 0xacf   :  { %954 = vrot.lane.b32.xlu1 %v2134_v46, %s2176_s15 }
 0xb41   :  { %v955_v47 = vpop.permute.xlu1 %954 }
 0xb42   :  { %v957_v48 = vsel %vm226_vm5, %v2132_v40, %v955_v47 }
 0xb43   :  { %1868 = vmatmul.mubr.msk.f32.vlgmr.msra.gmra.mrb[12].mxu0 %vm142_vm6, %v957_v48 }
 0xb44   :  { %2080 = vmatpush3.bf16.msra.mxu0 %v2295_v22  ;;  %1908 = vmatprep.mubr.msk.f32.mxu0 %vm2173_vm4, %v2174_v11 }
 0xb45   :  { %2081 = vmatprep.subr.bf16.mxu0 %v2171_v3 }
 0xb48   :  { %2083 = vmatpush3.bf16.msra.mxu0 %v2301_v24 }
 0xb49   :  { %2084 = vmatprep.subr.bf16.mxu0 %v2171_v3 }
 0xc16   :  { %v1027_v49 = vpop.f32.mrb[12].mxu0 }
 0xc17   :  { %v1032_v50 = vrot.slane %v1027_v49, 6  ;;  %1038 = vrot.lane.b32.xlu0 %v1027_v49, %s2175_s13  ;;  %v1869_v51 = vpop.f32.mrb[13].mxu0 }
 0xc19   :  { %v1034_v52 = vadd.f32 %v1032_v50, %v2313_v27 }
 0xc1b   :  { %2135 = vtanh.f32 %v1034_v52 }
 0xc25   :  { %v2136_v53 = vpop.eup %2135 }
 0xc26   :  { %v1037_v54 = vrot.slane %v2136_v53, 2 }
 0xc28   :  { %1879 = vmatmul.mubr.msk.f32.vlgmr.msra.gmra.mrb[10].mxu1 %vm226_vm5, %v1037_v54 }
 0xc29   :  { %2068 = vmatpush3.bf16.msra.mxu1 %v2233_v4  ;;  %1897 = vmatprep.mubr.msk.f32.mxu1 %vm2173_vm4, %v2174_v11 }
 0xc2a   :  { %2069 = vmatprep.subr.bf16.mxu1 %v2171_v3 }
 0xc2d   :  { %2071 = vmatpush3.bf16.msra.mxu1 %v2245_v9 }
 0xc2e   :  { %2072 = vmatprep.subr.bf16.mxu1 %v2171_v3 }
 0xc31   :  { %2074 = vmatpush3.bf16.msra.mxu1 %v2265_v15 }
 0xc32   :  { %2075 = vmatprep.subr.bf16.mxu1 %v2171_v3 }
 0xc35   :  { %2077 = vmatpush3.bf16.msra.mxu1 %v2278_v18 }
 0xc36   :  { %2096 = vmatprep.subr.bf16.mxu1 %v2171_v3 }
 0xc89   :  { %v1039_v55 = vpop.permute.xlu0 %1038 }
 0xcfb   :  { %v1109_v56 = vpop.f32.mrb[10].mxu1 }
 0xcfc   :  { %v1110_v57 = vadd.f32 %v1109_v56, %v1039_v55  ;;  %v1880_v58 = vpop.f32.mrb[11].mxu1 }
 0xcfe   :  { %v1113_v59 = vadd.f32 %v2333_v35, %v1110_v57 }
 0xd00   :  { %2137 = vtanh.f32 %v1113_v59 }
 0xd0a   :  { %v2138_v60 = vpop.eup %2137 }
 0xd0b   :  { %v1116_v61 = vrot.slane %v2138_v60, 6 }
 0xd0d   :  { %1117 = vrot.lane.b32.xlu1 %v1116_v61, %s2176_s15 }
 0xd7f   :  { %v1118_v62 = vpop.permute.xlu1 %1117 }
 0xd80   :  { %v1120_v63 = vsel %vm226_vm5, %v2136_v53, %v1118_v62 }
 0xd81   :  { %v1122_v0 = vrot.slane %v1120_v63, 2 }
 0xd83   :  { %1898 = vmatmul.mubr.msk.f32.vlgmr.msra.gmra.mrb[12].mxu1 %vm142_vm6, %v1122_v0 }
 0xd84   :  { %2098 = vmatpush3.bf16.msra.mxu1 %v2295_v22  ;;  %1938 = vmatprep.mubr.msk.f32.mxu1 %vm2173_vm4, %v2174_v11 }
 0xd85   :  { %2099 = vmatprep.subr.bf16.mxu1 %v2171_v3 }
 0xd88   :  { %2101 = vmatpush3.bf16.msra.mxu1 %v2301_v24 }
 0xd89   :  { %2102 = vmatprep.subr.bf16.mxu1 %v2171_v3 }
 0xe56   :  { %v1191_v1 = vpop.f32.mrb[12].mxu1 }
 0xe57   :  { %v1196_v2 = vrot.slane %v1191_v1, 4  ;;  %1202 = vrot.lane.b32.xlu0 %v1191_v1, %s2175_s13  ;;  %v1899_v5 = vpop.f32.mrb[13].mxu1 }
 0xe59   :  { %v1198_v6 = vadd.f32 %v1196_v2, %v2313_v27 }
 0xe5b   :  { %2139 = vtanh.f32 %v1198_v6 }
 0xe65   :  { %v2140_v7 = vpop.eup %2139 }
 0xe66   :  { %v1201_v8 = vrot.slane %v2140_v7, 4 }
 0xe68   :  { %1909 = vmatmul.mubr.msk.f32.vlgmr.msra.gmra.mrb[14].mxu0 %vm226_vm5, %v1201_v8 }
 0xe69   :  { %2086 = vmatpush3.bf16.msra.mxu0 %v2233_v4  ;;  %1927 = vmatprep.mubr.msk.f32.mxu0 %vm2173_vm4, %v2174_v11 }
 0xe6a   :  { %2087 = vmatprep.subr.bf16.mxu0 %v2171_v3 }
 0xe6d   :  { %2089 = vmatpush3.bf16.msra.mxu0 %v2245_v9 }
 0xe6e   :  { %2090 = vmatprep.subr.bf16.mxu0 %v2171_v3 }
 0xe71   :  { %2092 = vmatpush3.bf16.msra.mxu0 %v2265_v15 }
 0xe72   :  { %2093 = vmatprep.subr.bf16.mxu0 %v2171_v3 }
 0xe75   :  { %2095 = vmatpush3.bf16.msra.mxu0 %v2278_v18 }
 0xec9   :  { %v1203_v22 = vpop.permute.xlu0 %1202 }
 0xf3b   :  { %v1273_v24 = vpop.f32.mrb[14].mxu0 }
 0xf3c   :  { %v1274_v10 = vadd.f32 %v1273_v24, %v1203_v22  ;;  %v1910_v12 = vpop.f32.mrb[15].mxu0 }
 0xf3e   :  { %v1277_v4 = vadd.f32 %v2333_v35, %v1274_v10 }
 0xf40   :  { %2141 = vtanh.f32 %v1277_v4 }
 0xf4a   :  { %v2142_v13 = vpop.eup %2141 }
 0xf4b   :  { %v1280_v14 = vrot.slane %v2142_v13, 4 }
 0xf4d   :  { %1281 = vrot.lane.b32.xlu1 %v1280_v14, %s2176_s15 }
 0xfbf   :  { %v1282_v9 = vpop.permute.xlu1 %1281 }
 0xfc0   :  { %v1284_v16 = vsel %vm226_vm5, %v2140_v7, %v1282_v9 }
 0xfc1   :  { %v1286_v17 = vrot.slane %v1284_v16, 4 }
 0xfc3   :  { %1928 = vmatmul.mubr.msk.f32.vlgmr.msra.gmra.mrb[16].mxu0 %vm142_vm6, %v1286_v17 }
0x1096   :  { %v1355_v15 = vpop.f32.mrb[16].mxu0 }
0x1097   :  { %v1360_v19 = vrot.slane %v1355_v15, 2  ;;  %1366 = vrot.lane.b32.xlu0 %v1355_v15, %s2175_s13  ;;  %v1929_v18 = vpop.f32.mrb[17].mxu0 }
0x1099   :  { %v1362_v20 = vadd.f32 %v1360_v19, %v2313_v27  ;;  %v1450_v27 = vld [vmem:[%s2520_s6 + $0x8] sm:$0xff] }
0x109b   :  { %2143 = vtanh.f32 %v1362_v20 }
0x10a5   :  { %v2144_v21 = vpop.eup %2143 }
0x10a6   :  { %v1365_v23 = vrot.slane %v2144_v21, 6 }
0x10a8   :  { %1939 = vmatmul.mubr.msk.f32.vlgmr.msra.gmra.mrb[14].mxu1 %vm226_vm5, %v1365_v23 }
0x10a9   :  { %1949 = vmatprep.mubr.msk.f32.mxu1 %vm2173_vm4, %v2174_v11  ;;  %v2103_v11 = vpack.c.bf16 %v1450_v27, %v1449_v31 }
0x10ab   :  { %2104 = vmatpush3.bf16.msra.mxu1 %v2103_v11 }
0x10ac   :  { %2105 = vmatprep.subr.bf16.mxu1 %v2171_v3 }
0x1109   :  { %v1367_v25 = vpop.permute.xlu0 %1366 }
0x117b   :  { %v1437_v26 = vpop.f32.mrb[14].mxu1 }
0x117c   :  { %v1438_v28 = vadd.f32 %v1437_v26, %v1367_v25  ;;  %v1940_v29 = vpop.f32.mrb[15].mxu1 }
0x117e   :  { %v1441_v30 = vadd.f32 %v2333_v35, %v1438_v28  ;;  %v2106_v35 = vpack.c.bf16 %v1452_v33, %v1451_v32 }
0x1180   :  { %2145 = vtanh.f32 %v1441_v30  ;;  %2107 = vmatpush3.bf16.msra.mxu1 %v2106_v35 }
0x118a   :  { %v2146_v34 = vpop.eup %2145 }
0x118b   :  { %v1444_v36 = vrot.slane %v2146_v34, 2 }
0x118d   :  { %1445 = vrot.lane.b32.xlu1 %v1444_v36, %s2176_s15 }
0x11ff   :  { %v1446_v37 = vpop.permute.xlu1 %1445 }
0x1200   :  { %v1448_v38 = vsel %vm226_vm5, %v2144_v21, %v1446_v37 }
0x1201   :  { %v1461_v39 = vrot.slane %v1448_v38, 6 }
0x1203   :  { %1462 = vrot.lane.b32.xlu0 %v1461_v39, %s2175_s13 }
0x1275   :  { %v1463_v40 = vpop.permute.xlu0 %1462 }
0x1276   :  { %1950 = vmatmul.mubr.msk.f32.vlgmr.msra.gmra.mrb[16].mxu1 %vm226_vm5, %v1463_v40 }
0x1349   :  { %v1532_v3 = vpop.f32.mrb[16].mxu1 }
0x134a   :  { %v1533_v42 = vadd.f32 %v1571_v41, %v1532_v3  ;;  %v1951_v43 = vpop.f32.mrb[17].mxu1 }
0x134c   :  { %1536 = vst [vmem:[#allocation2] sm:$0x3] %v1533_v42 }
0x134d   :  { %2158 = shalt.err (!%p2155_p4)
}
0x134e   :  { %s2159_s0 = scalar_lea.hbm %s2522_s8, 32 }
0x134f   :  { %p2160_p5 = scmp.ne.s32.totalorder %s2522_s8, %s2159_s0  ;;  %p2163_p6 = scmp.lt.u32.totalorder %s2159_s0, %s2522_s8 }
0x1351   :  { %p2165_p7 = pnand %p2163_p6, %p2160_p5 }
0x1353   :  { %2168 = shalt.err (!%p2165_p7)
}
0x1354   :  { %1546 = dma.vmem_to_hbm [thread:$0]  %s1544_s24, 32, %s2522_s8, [#allocation3]  }
0x1355   :  { %2169 = dma.done.wait [#allocation3], 32  }
0x1356   :  { %2170 = vsyncadd [#allocation3], 4294967264 }
0x1357   :  { %1550 = vsyncpa [#allocation3], 1 }

</bundles_post_ra>
